<compile_context>
chip_gen: v6e
topology: v6e:2x2x1
jax: 0.10.0
libtpu: 0.0.40
codegen_flags: <defaults>
</compile_context>

<pallas_src>
import functools
import math

import jax
import jax.numpy as jnp
from jax import lax
from jax.experimental import pallas as pl
from jax.experimental.pallas import tpu as pltpu

LANES = 128
SUBLANES = 8
CHUNK_ROWS = 512              # sub-chunk for the in-kernel streaming reduce


def _sublane_multiple(dtype):
    # Required second-to-last block-dim multiple per element width.
    return {4: 8, 2: 16, 1: 32}.get(jnp.dtype(dtype).itemsize, SUBLANES)


def _tiling_budget():
    """(bytes per input block, scoped-VMEM limit) chosen per TPU generation."""
    try:
        vmem_cap = int(pltpu.get_tpu_info().vmem_capacity_bytes)
    except Exception:
        vmem_cap = 64 * 1024 * 1024       # conservative (v7x-like) fallback
    if vmem_cap >= 100 * 1024 * 1024:     # v5e / v6e: 128 MiB VMEM per TC
        return 4 * 1024 * 1024, 48 * 1024 * 1024
    # v7x: 64 MiB VMEM per TC (or unknown hardware)
    return 2 * 1024 * 1024, 32 * 1024 * 1024


def _tensorcores_per_device():
    """TensorCores addressable by one pallas_call (megacore / v7x = 2)."""
    try:
        dev = jax.devices()[0]
        n = getattr(dev, "num_cores", None)
        if isinstance(n, int) and n >= 1:
            return n
        kind = str(getattr(dev, "device_kind", "")).lower()
        if "v7" in kind:
            return 2
    except Exception:
        pass
    return 1


def _choose_tiling(rows, sub, itemsize, block_bytes):
    """Pick (tile_rows, chunk_rows): tile_rows % chunk_rows == 0, both % sub == 0."""
    if rows < sub:
        return 0, 0
    cap = max(sub, block_bytes // (LANES * itemsize))
    cap = (cap // sub) * sub
    tile = min(cap, (rows // sub) * sub)
    chunk = min(CHUNK_ROWS, tile)
    chunk = max(sub, (chunk // sub) * sub)
    tile = (tile // chunk) * chunk
    return tile, chunk


def _hard_dice_partial_kernel(logits_ref, tgt_ref, part_ref, acc_ref, *,
                              steps, steps_per_core, chunk_rows, n_chunks,
                              threshold, use_logit, logit, use_guard):
    s = pl.program_id(1)                      # streaming step (reduction axis)

    @pl.when(s == 0)
    def _init():
        acc_ref[...] = jnp.zeros_like(acc_ref)

    def _accumulate():
        def body(i, carry):
            acc_i, acc_u = carry
            r0 = pl.multiple_of(i * chunk_rows, chunk_rows)
            x = logits_ref[pl.ds(r0, chunk_rows), :].astype(jnp.float32)
            t = tgt_ref[pl.ds(r0, chunk_rows), :]
            if use_logit:
                hard = (x > logit).astype(jnp.float32)       # == sigmoid(x) > th
            else:
                hard = (jax.nn.sigmoid(x) > threshold).astype(jnp.float32)
            tgt1 = (t == 1).astype(jnp.float32)
            # Pure-VPU sublane-grouped reduce into vreg-resident (8, 128) accs.
            acc_i = acc_i + jnp.sum(
                (hard * tgt1).reshape(-1, SUBLANES, LANES), axis=0)
            acc_u = acc_u + jnp.sum(
                (hard + tgt1).reshape(-1, SUBLANES, LANES), axis=0)
            return acc_i, acc_u

        zero = jnp.zeros((SUBLANES, LANES), jnp.float32)
        acc_i, acc_u = lax.fori_loop(0, n_chunks, body, (zero, zero))
        acc_ref[0] += acc_i
        acc_ref[1] += acc_u

    if use_guard:
        c = pl.program_id(0)
        g = c * steps_per_core + s
        pl.when(g < steps)(_accumulate)       # skip over-subscribed blocks
    else:
        _accumulate()

    @pl.when(s == pl.num_programs(1) - 1)
    def _emit():
        # One (2, 128) lane-dense partial-sum row per core (sublane reduce).
        part_ref[0] = jnp.sum(acc_ref[...], axis=1)


def _partial_sums_jnp(x, t, *, threshold, use_logit, logit):
    """Plain-jnp partial sums [intersection, sum_hard + sum_target] for tails."""
    xf = x.astype(jnp.float32)
    if use_logit:
        hard_b = xf > logit
    else:
        hard_b = jax.nn.sigmoid(xf) > threshold
    hard = hard_b.astype(jnp.float32)
    tgt1 = (t == 1).astype(jnp.float32)
    return jnp.stack([jnp.sum(hard * tgt1), jnp.sum(hard) + jnp.sum(tgt1)])


def hard_dice(outputs, targets, threshold=0.5, deduct_intersection=False):
    """Pallas TPU implementation of HardDice.forward.  Returns an f32 scalar."""
    assert outputs.shape == targets.shape
    threshold = float(threshold)
    use_logit = 0.0 < threshold < 1.0
    logit = math.log(threshold / (1.0 - threshold)) if use_logit else 0.0

    n = int(outputs.size)
    rows = n // LANES
    sub = max(_sublane_multiple(outputs.dtype), _sublane_multiple(targets.dtype))
    itemsize = max(jnp.dtype(outputs.dtype).itemsize,
                   jnp.dtype(targets.dtype).itemsize)

    block_bytes, vmem_limit = _tiling_budget()
    tile_rows, chunk_rows = _choose_tiling(rows, sub, itemsize, block_bytes)

    x_flat = outputs.reshape(-1)
    t_flat = targets.reshape(-1)

    if tile_rows > 0:
        steps = rows // tile_rows
        rows_main = steps * tile_rows
        n_main = rows_main * LANES
        n_lane = rows * LANES

        if n_lane == n:
            # Lane-aligned: pure reshape, no padded/sliced copies.
            x2d = x_flat.reshape(rows, LANES)
            t2d = t_flat.reshape(rows, LANES)
        else:
            # Lane-unaligned remainder (<128 elems) is reduced in the jnp tail.
            x2d = x_flat[:n_lane].reshape(rows, LANES)
            t2d = t_flat[:n_lane].reshape(rows, LANES)

        num_cores = max(1, min(_tensorcores_per_device(), steps))
        steps_per_core = pl.cdiv(steps, num_cores)
        use_guard = (steps_per_core * num_cores) != steps

        if use_guard:
            # Clamp so an over-subscribed core re-reads the last valid block;
            # its contribution is skipped in-kernel (g >= steps).
            def idx_map(c, s):
                return (jnp.minimum(c * steps_per_core + s, steps - 1), 0)
        else:
            def idx_map(c, s):
                return (c * steps_per_core + s, 0)

        kernel = functools.partial(
            _hard_dice_partial_kernel,
            steps=steps, steps_per_core=steps_per_core,
            chunk_rows=chunk_rows, n_chunks=tile_rows // chunk_rows,
            threshold=threshold, use_logit=use_logit, logit=logit,
            use_guard=use_guard)

        partials = pl.pallas_call(
            kernel,
            out_shape=jax.ShapeDtypeStruct((num_cores, 2, LANES), jnp.float32),
            grid_spec=pltpu.PrefetchScalarGridSpec(
                num_scalar_prefetch=0,
                grid=(num_cores, steps_per_core),
                in_specs=[
                    pl.BlockSpec((tile_rows, LANES), idx_map),
                    pl.BlockSpec((tile_rows, LANES), idx_map),
                ],
                out_specs=pl.BlockSpec((1, 2, LANES), lambda c, s: (c, 0, 0)),
                scratch_shapes=[pltpu.VMEM((2, SUBLANES, LANES), jnp.float32)],
            ),
            compiler_params=pltpu.CompilerParams(
                dimension_semantics=("parallel", "arbitrary"),
                vmem_limit_bytes=vmem_limit,
            ),
        )(x2d, t2d)
        main_sums = jnp.sum(partials, axis=(0, 2))               # (2,)
    else:
        # Input smaller than one sublane block: everything goes to the tail.
        main_sums = jnp.zeros((2,), jnp.float32)
        n_main = 0

    if n_main < n:
        tail_sums = _partial_sums_jnp(
            x_flat[n_main:], t_flat[n_main:],
            threshold=threshold, use_logit=use_logit, logit=logit)
    else:
        tail_sums = jnp.zeros((2,), jnp.float32)

    total = main_sums + tail_sums
    intersection, sum_both = total[0], total[1]          # sum_both = hard + tgt
    eps = jnp.float32(1e-10)
    if deduct_intersection:
        union = sum_both - intersection + eps
    else:
        union = sum_both + eps
    hd = 1.0 + jnp.log(2.0 * intersection / union)
    return jnp.clip(hd, 0.0, 1.0)


def _reference_hard_dice(outputs, targets, threshold=0.5,
                         deduct_intersection=False):
    eps = 1e-10
    dice_target = (targets == 1).astype(jnp.float32)
    dice_output = jax.nn.sigmoid(outputs.astype(jnp.float32))
    hard_output = (dice_output > threshold).astype(jnp.float32)
    intersection = jnp.sum(hard_output * dice_target)
    if deduct_intersection:
        union = jnp.sum(hard_output) + jnp.sum(dice_target) - intersection + eps
    else:
        union = jnp.sum(hard_output) + jnp.sum(dice_target) + eps
    return jnp.clip(1.0 + jnp.log(2.0 * intersection / union), 0.0, 1.0)


if __name__ == "__main__":
    key = jax.random.PRNGKey(0)
    k1, k2, k3, k4, k5, k6 = jax.random.split(key, 6)

    # Primary NCHW case (lane-aligned: 2*4*16*16 = 2048 elements = 16 rows of 128).
    N, C, H, W = 2, 4, 16, 16
    outputs = jax.random.normal(k1, (N, C, H, W), dtype=jnp.float32) * 2.0
    targets = (jax.random.uniform(k2, (N, C, H, W)) > 0.5).astype(jnp.float32)

    for deduct in (False, True):
        got = jax.block_until_ready(
            hard_dice(outputs, targets, threshold=0.5, deduct_intersection=deduct))
        want = jax.block_until_ready(
            _reference_hard_dice(outputs, targets, threshold=0.5,
                                 deduct_intersection=deduct))
        assert jnp.allclose(got, want, atol=1e-5, rtol=1e-5), (deduct, got, want)

    # Ragged case (4080 elements: kernel on the aligned prefix + jnp tail).
    outputs2 = jax.random.normal(k3, (2, 3, 17, 40), dtype=jnp.float32) * 2.0
    targets2 = (jax.random.uniform(k4, (2, 3, 17, 40)) > 0.5).astype(jnp.float32)
    got2 = jax.block_until_ready(hard_dice(outputs2, targets2))
    want2 = jax.block_until_ready(_reference_hard_dice(outputs2, targets2))
    assert jnp.allclose(got2, want2, atol=1e-5, rtol=1e-5), (got2, want2)

    # Moderate case to exercise the multi-step / multi-chunk streaming path.
    outputs3 = jax.random.normal(k5, (3, 4, 512, 512), dtype=jnp.float32) * 2.0
    targets3 = (jax.random.uniform(k6, (3, 4, 512, 512)) > 0.5).astype(jnp.float32)
    got3 = jax.block_until_ready(hard_dice(outputs3, targets3))
    want3 = jax.block_until_ready(_reference_hard_dice(outputs3, targets3))
    assert jnp.allclose(got3, want3, atol=1e-5, rtol=1e-5), (got3, want3)

    print("KERNEL_OK")
</pallas_src>

<mosaic_0001>
module attributes {stable_mosaic.version = 11 : i64} {
  func.func @_hard_dice_partial_kernel(%arg0: i32, %arg1: i32, %arg2: memref<16x128xf32, #tpu.memory_space<vmem>>, %arg3: memref<16x128xf32, #tpu.memory_space<vmem>>, %arg4: memref<1x2x128xf32, #tpu.memory_space<vmem>>, %arg5: memref<2x8x128xf32, #tpu.memory_space<vmem>>) attributes {dimension_semantics = [#tpu.dimension_semantics<parallel>, #tpu.dimension_semantics<arbitrary>], iteration_bounds = array<i64: 1, 1>, scalar_prefetch = 0 : i64, scratch_operands = 1 : i64, tpu.core_type = #tpu.core_type<tc>, window_params = [{transform_indices = @transform_0, window_bounds = array<i64: 16, 128>}, {transform_indices = @transform_1, window_bounds = array<i64: 16, 128>}, {transform_indices = @transform_2, window_bounds = array<i64: 1, 2, 128>}]} {
    %c0_i32 = arith.constant 0 : i32
    %0 = arith.cmpi eq, %arg1, %c0_i32 : i32
    %1 = arith.extui %0 : i1 to i32
    %c0_i32_0 = arith.constant 0 : i32
    %2 = arith.cmpi ne, %1, %c0_i32_0 : i32
    scf.if %2 {
      %cst_20 = arith.constant 0.000000e+00 : f32
      %41 = vector.broadcast %cst_20 : f32 to vector<2x8x128xf32>
      %c0_21 = arith.constant 0 : index
      %c0_22 = arith.constant 0 : index
      %c0_23 = arith.constant 0 : index
      %42 = vector.load %arg5[%c0_21, %c0_22, %c0_23] : memref<2x8x128xf32, #tpu.memory_space<vmem>>, vector<2x8x128xf32>
      tpu.vector_store %arg5[%c0_21, %c0_22, %c0_23], %41 {strides = array<i32>} : memref<2x8x128xf32, #tpu.memory_space<vmem>>, vector<2x8x128xf32>,
    } else {
    }
    %cst = arith.constant 0.000000e+00 : f32
    %3 = vector.broadcast %cst : f32 to vector<8x128xf32>
    %c0_i32_1 = arith.constant 0 : i32
    %c16_i32 = arith.constant 16 : i32
    %4 = arith.muli %c0_i32_1, %c16_i32 : i32
    %5 = tpu.assume_multiple %4, 16 : i32
    %6 = arith.index_cast %5 : i32 to index
    %c0 = arith.constant 0 : index
    %7 = vector.load %arg2[%6, %c0] : memref<16x128xf32, #tpu.memory_space<vmem>>, vector<16x128xf32>
    %8 = arith.index_cast %5 : i32 to index
    %c0_2 = arith.constant 0 : index
    %9 = vector.load %arg3[%8, %c0_2] : memref<16x128xf32, #tpu.memory_space<vmem>>, vector<16x128xf32>
    %cst_3 = arith.constant 0.000000e+00 : f32
    %10 = vector.broadcast %cst_3 : f32 to vector<16x128xf32>
    %11 = arith.cmpf ogt, %7, %10 : vector<16x128xf32>
    %12 = arith.extui %11 : vector<16x128xi1> to vector<16x128xi32>
    %13 = arith.sitofp %12 : vector<16x128xi32> to vector<16x128xf32>
    %cst_4 = arith.constant 1.000000e+00 : f32
    %14 = vector.broadcast %cst_4 : f32 to vector<16x128xf32>
    %15 = arith.cmpf oeq, %9, %14 : vector<16x128xf32>
    %16 = arith.extui %15 : vector<16x128xi1> to vector<16x128xi32>
    %17 = arith.sitofp %16 : vector<16x128xi32> to vector<16x128xf32>
    %18 = arith.mulf %13, %17 : vector<16x128xf32>
    %19 = vector.shape_cast %18 : vector<16x128xf32> to vector<2x8x128xf32>
    %cst_5 = arith.constant dense<0.000000e+00> : vector<8x128xf32>
    %20 = vector.multi_reduction <add>, %19, %cst_5 [0] : vector<2x8x128xf32> to vector<8x128xf32>
    %21 = arith.addf %3, %20 : vector<8x128xf32>
    %22 = arith.addf %13, %17 : vector<16x128xf32>
    %23 = vector.shape_cast %22 : vector<16x128xf32> to vector<2x8x128xf32>
    %cst_6 = arith.constant dense<0.000000e+00> : vector<8x128xf32>
    %24 = vector.multi_reduction <add>, %23, %cst_6 [0] : vector<2x8x128xf32> to vector<8x128xf32>
    %25 = arith.addf %3, %24 : vector<8x128xf32>
    %c1_i32 = arith.constant 1 : i32
    %c0_7 = arith.constant 0 : index
    %c0_8 = arith.constant 0 : index
    %c0_9 = arith.constant 0 : index
    %26 = vector.load %arg5[%c0_7, %c0_8, %c0_9] : memref<2x8x128xf32, #tpu.memory_space<vmem>>, vector<1x8x128xf32>
    %27 = vector.shape_cast %26 : vector<1x8x128xf32> to vector<8x128xf32>
    %28 = arith.addf %27, %21 : vector<8x128xf32>
    %c0_10 = arith.constant 0 : index
    %c0_11 = arith.constant 0 : index
    %c0_12 = arith.constant 0 : index
    %29 = vector.load %arg5[%c0_10, %c0_11, %c0_12] : memref<2x8x128xf32, #tpu.memory_space<vmem>>, vector<1x8x128xf32>
    %30 = vector.shape_cast %29 : vector<1x8x128xf32> to vector<8x128xf32>
    %31 = vector.shape_cast %28 : vector<8x128xf32> to vector<1x8x128xf32>
    tpu.vector_store %arg5[%c0_10, %c0_11, %c0_12], %31 {strides = array<i32>} : memref<2x8x128xf32, #tpu.memory_space<vmem>>, vector<1x8x128xf32>,
    %c1 = arith.constant 1 : index
    %c0_13 = arith.constant 0 : index
    %c0_14 = arith.constant 0 : index
    %32 = vector.load %arg5[%c1, %c0_13, %c0_14] : memref<2x8x128xf32, #tpu.memory_space<vmem>>, vector<1x8x128xf32>
    %33 = vector.shape_cast %32 : vector<1x8x128xf32> to vector<8x128xf32>
    %34 = arith.addf %33, %25 : vector<8x128xf32>
    %c1_15 = arith.constant 1 : index
    %c0_16 = arith.constant 0 : index
    %c0_17 = arith.constant 0 : index
    %35 = vector.load %arg5[%c1_15, %c0_16, %c0_17] : memref<2x8x128xf32, #tpu.memory_space<vmem>>, vector<1x8x128xf32>
    %36 = vector.shape_cast %35 : vector<1x8x128xf32> to vector<8x128xf32>
    %37 = vector.shape_cast %34 : vector<8x128xf32> to vector<1x8x128xf32>
    tpu.vector_store %arg5[%c1_15, %c0_16, %c0_17], %37 {strides = array<i32>} : memref<2x8x128xf32, #tpu.memory_space<vmem>>, vector<1x8x128xf32>,
    %c0_i32_18 = arith.constant 0 : i32
    %38 = arith.cmpi eq, %arg1, %c0_i32_18 : i32
    %39 = arith.extui %38 : i1 to i32
    %c0_i32_19 = arith.constant 0 : i32
    %40 = arith.cmpi ne, %39, %c0_i32_19 : i32
    scf.if %40 {
      %c0_20 = arith.constant 0 : index
      %c0_21 = arith.constant 0 : index
      %c0_22 = arith.constant 0 : index
      %41 = vector.load %arg5[%c0_20, %c0_21, %c0_22] : memref<2x8x128xf32, #tpu.memory_space<vmem>>, vector<2x8x128xf32>
      %cst_23 = arith.constant dense<0.000000e+00> : vector<2x128xf32>
      %42 = vector.multi_reduction <add>, %41, %cst_23 [1] : vector<2x8x128xf32> to vector<2x128xf32>
      %c0_24 = arith.constant 0 : index
      %c0_25 = arith.constant 0 : index
      %c0_26 = arith.constant 0 : index
      %43 = vector.load %arg4[%c0_24, %c0_25, %c0_26] : memref<1x2x128xf32, #tpu.memory_space<vmem>>, vector<1x2x128xf32>
      %44 = vector.shape_cast %43 : vector<1x2x128xf32> to vector<2x128xf32>
      %45 = vector.shape_cast %42 : vector<2x128xf32> to vector<1x2x128xf32>
      tpu.vector_store %arg4[%c0_24, %c0_25, %c0_26], %45 {strides = array<i32>} : memref<1x2x128xf32, #tpu.memory_space<vmem>>, vector<1x2x128xf32>,
    } else {
    }
    return
  }
  func.func @transform_0(%arg0: i32, %arg1: i32) -> (i32, i32) {
    %c1_i32 = arith.constant 1 : i32
    %0 = arith.muli %arg0, %c1_i32 : i32
    %1 = arith.addi %0, %arg1 : i32
    %c0_i32 = arith.constant 0 : i32
    %c0_i32_0 = arith.constant 0 : i32
    return %1, %c0_i32 : i32, i32
  }
  func.func @transform_1(%arg0: i32, %arg1: i32) -> (i32, i32) {
    %c1_i32 = arith.constant 1 : i32
    %0 = arith.muli %arg0, %c1_i32 : i32
    %1 = arith.addi %0, %arg1 : i32
    %c0_i32 = arith.constant 0 : i32
    %c0_i32_0 = arith.constant 0 : i32
    return %1, %c0_i32 : i32, i32
  }
  func.func @transform_2(%arg0: i32, %arg1: i32) -> (i32, i32, i32) {
    %c0_i32 = arith.constant 0 : i32
    %c0_i32_0 = arith.constant 0 : i32
    %c0_i32_1 = arith.constant 0 : i32
    return %arg0, %c0_i32, %c0_i32_0 : i32, i32, i32
  }
}

</mosaic_0001>

<bundles_post_ra>
// kernel: tpu_custom_call.1
= control target key start
LH: loop header
LB: loop body
LE: loop exit
PB: predicated region body
PF: predicated region fallthrough
CT: control target
= control target key end

     0   :  { %7 = vsyncpa [#allocation4], 0  ;;  %s234_s0 = inlined_call_operand.hbm [shape: f32[16,128], index: 0, kind: input, shape index: {}]   ;;  %s235_s1 = inlined_call_operand.hbm [shape: f32[16,128], index: 1, kind: input, shape index: {}]   ;;  %s236_s2 = inlined_call_operand.hbm [shape: f32[1,2,128], index: 2, kind: output, shape index: {}]  }
   0x1   :  { %8 = vsyncpa [#allocation7], 0 }
   0x2   :  { %9 = vsyncpa [#allocation5], 0  ;;  %s204_s9 = smov [#allocation3]  }
   0x3   :  { %s19_s10 = sshll.u32 %s204_s9, 4  ;;  %s20_s10 = int_to_ptr.vmem [resolvable:$true] %s19_s10 }
   0x4   :  { %s146_s11 = scalar_lea.vmem %s20_s10, 256  ;;  %p151_p1 = scmp.lt.s32.totalorder %s20_s10, %s20_s10 }
   0x5   :  { %p147_p0 = scmp.ne.s32.totalorder %s20_s10, %s146_s11  ;;  %p152_p2 = scmp.lt.s32.totalorder %s146_s11, %s146_s11 }
   0x7   :  { %p153_p3 = por %p152_p2, %p151_p1 }
   0x9   :  { %p154_p4 = pnand %p153_p3, %p147_p0 }
   0xb   :  { %157 = shalt.err (!%p154_p4)
}
   0xc   :  { %s205_s12 = smov 128   ;;  %s206_s13 = smov 8  }
   0xd   :  { %25 = dma.hbm_to_vmem [thread:$0]  %s234_s0, 256, %s20_s10, [#allocation4], %s205_s12, %s205_s12, %s206_s13  }
   0xe   :  { %s207_s16 = smov [#allocation6]  }
   0xf   :  { %s35_s17 = sshll.u32 %s207_s16, 4  ;;  %s36_s17 = int_to_ptr.vmem [resolvable:$true] %s35_s17 }
  0x10   :  { %s166_s18 = scalar_lea.vmem %s36_s17, 256  ;;  %p171_p6 = scmp.lt.s32.totalorder %s36_s17, %s36_s17 }
  0x11   :  { %p167_p5 = scmp.ne.s32.totalorder %s36_s17, %s166_s18  ;;  %p172_p7 = scmp.lt.s32.totalorder %s166_s18, %s166_s18 }
  0x13   :  { %p173_p8 = por %p172_p7, %p171_p6 }
  0x15   :  { %p174_p9 = pnand %p173_p8, %p167_p5 }
  0x17   :  { %177 = shalt.err (!%p174_p9)
}
  0x18   :  { %41 = dma.hbm_to_vmem [thread:$0]  %s235_s1, 256, %s36_s17, [#allocation7], %s205_s12, %s205_s12, %s206_s13  }
  0x19   :  { %198 = dma.done.wait [#allocation4], 256  }
  0x1a   :  { %199 = vsyncadd [#allocation4], 4294967040 }
  0x1b   :  { %200 = dma.done.wait [#allocation7], 256  }
  0x1c   :  { %201 = vsyncadd [#allocation7], 4294967040  ;;  %v58_v0 = vld [vmem:[#allocation3] sm:$0xff]  ;;  %v59_v1 = vld [vmem:[#allocation3 + $0x8] sm:$0xff]  ;;  %v208_v4 = vmov 0.0   ;;  %s209_s0 = smov [#allocation8]  }
  0x1d   :  { %v60_v2 = vld [vmem:[#allocation6] sm:$0xff]  ;;  %v61_v3 = vld [vmem:[#allocation6 + $0x8] sm:$0xff]  ;;  %vm62_vm0 = vcmp.gt.f32.partialorder %v58_v0, 0.0  ;;  %vm63_vm1 = vcmp.gt.f32.partialorder %v59_v1, 0.0  ;;  %s118_s1 = sshll.u32 %s209_s0, 4  ;;  %vm108_vm4 = vcmask 1041409   ;;  %s119_s1 = int_to_ptr.vmem [resolvable:$true] %s118_s1 }
  0x1e   :  { %vm68_vm2 = vcmp.eq.f32.partialorder %v60_v2, 1.0  ;;  %v128_v5 = vsel %vm62_vm0, 1.0, %v208_v4  ;;  %v129_v6 = vsel %vm63_vm1, 1.0, %v208_v4  ;;  %vm69_vm3 = vcmp.eq.f32.partialorder %v61_v3, 1.0  ;;  %s178_s21 = scalar_lea.vmem %s119_s1, 32  ;;  %p183_p11 = scmp.lt.s32.totalorder %s119_s1, %s119_s1 }
  0x1f   :  { %v130_v7 = vsel %vm68_vm2, 1.0, %v208_v4  ;;  %v131_v8 = vsel %vm69_vm3, 1.0, %v208_v4  ;;  %p179_p10 = scmp.ne.s32.totalorder %s119_s1, %s178_s21  ;;  %p184_p12 = scmp.lt.s32.totalorder %s178_s21, %s178_s21 }
  0x20   :  { %v74_v9 = vmul.f32 %v130_v7, %v128_v5  ;;  %v78_v10 = vadd.f32 %v130_v7, %v128_v5  ;;  %v75_v11 = vmul.f32 %v131_v8, %v129_v6  ;;  %v79_v12 = vadd.f32 %v131_v8, %v129_v6 }
  0x21   :  { %p185_p13 = por %p184_p12, %p183_p11 }
  0x22   :  { %v76_v13 = vadd.f32 %v75_v11, %v74_v9  ;;  %v80_v14 = vadd.f32 %v79_v12, %v78_v10 }
  0x23   :  { %p186_p0 = pnand %p185_p13, %p179_p10 }
  0x24   :  { %v94_v15 = vrot.slane %v76_v13, 4  ;;  %v100_v16 = vrot.slane %v80_v14, 4 }
  0x26   :  { %v95_v17 = vadd.f32 %v94_v15, %v76_v13  ;;  %v101_v18 = vadd.f32 %v100_v16, %v80_v14 }
  0x28   :  { %v96_v19 = vrot.slane %v95_v17, 2  ;;  %v102_v20 = vrot.slane %v101_v18, 2 }
  0x2a   :  { %v97_v21 = vadd.f32 %v96_v19, %v95_v17  ;;  %v103_v22 = vadd.f32 %v102_v20, %v101_v18 }
  0x2c   :  { %v98_v23 = vrot.slane %v97_v21, 1  ;;  %v104_v24 = vrot.slane %v103_v22, 1 }
  0x2e   :  { %v99_v25 = vadd.f32 %v98_v23, %v97_v21  ;;  %v105_v26 = vadd.f32 %v104_v24, %v103_v22 }
  0x30   :  { %v109_v27 = vsel %vm108_vm4, %v105_v26, %v99_v25 }
  0x31   :  { %111 = vst [vmem:[#allocation8] sm:$0x3] %v109_v27 }
  0x32   :  { %189 = shalt.err (!%p186_p0)
}
  0x33   :  { %121 = dma.vmem_to_hbm [thread:$0]  %s119_s1, 32, %s236_s2, [#allocation5]  }
  0x34   :  { %202 = dma.done.wait [#allocation5], 32  }
  0x35   :  { %203 = vsyncadd [#allocation5], 4294967264 }
  0x36   :  { %125 = vsyncpa [#allocation4], 1 }
  0x37   :  { %126 = vsyncpa [#allocation7], 1 }
  0x38   :  { %127 = vsyncpa [#allocation5], 1 }

</bundles_post_ra>
